<compile_context>
chip_gen: v6e
topology: v6e:2x2x1
jax: 0.10.0
libtpu: 0.0.40
codegen_flags: <defaults>
</compile_context>

<pallas_src>
import functools

import jax
import jax.numpy as jnp
import numpy as np
from jax.experimental import pallas as pl
from jax.experimental.pallas import tpu as pltpu


def _round_up(x, m):
    return (x + m - 1) // m * m


# VMEM byte budget for the double-buffered streamed (real, fake) tiles.
_STREAM_VMEM_BUDGET = 24 << 20


def _pick_batch_tile(B, F, in_bytes):
    """Choose the batch tile TB from a VMEM byte budget (no wrapper padding)."""
    per_row = 2 * F * in_bytes                  # real + fake, one buffer
    cap = _STREAM_VMEM_BUDGET // (2 * per_row)  # double-buffered
    cap = max(8, min((int(cap) // 8) * 8, 2048))
    if B <= cap:
        return B                                # single full-batch tile, no mask
    for tb in range(cap, 7, -8):                # prefer a tile that divides B
        if B % tb == 0:
            return tb
    return cap                                  # ragged last tile, masked in-kernel


def _wgan_gp_kernel(batch, tb, needs_mask):
    """Kernel factory. `batch` = true batch size, `tb` = batch tile (static)."""

    def kernel(real_ref, fake_ref, alpha_ref, w1_ref, w2_ref, gram_ref, b_ref,
               part_ref):
        step = pl.program_id(0)

        real = real_ref[...]                    # (TB, F)  streamed
        fake = fake_ref[...]                    # (TB, F)  streamed
        alpha = alpha_ref[...]                  # (TB, 1)  streamed
        w1 = w1_ref[...]                        # (F, Hp)  resident, 1-buffered
        w2 = w2_ref[...]                        # (1, Hp)  resident
        gram = gram_ref[...]                    # (Hp, Hp) = W1^T W1, resident
        b = b_ref[0, 0]                         # scalar bias (SMEM)

        # Two MXU pushes; no stacked LHS, no concatenate.
        h_real = jnp.dot(real, w1, preferred_element_type=jnp.float32)  # (TB,Hp)
        h_fake = jnp.dot(fake, w1, preferred_element_type=jnp.float32)  # (TB,Hp)
        # First layer is linear -> interpolate in hidden space (TB,Hp not TB,F).
        h_interp = h_fake + alpha * (h_real - h_fake)

        a_r = jnp.tanh(h_real)
        a_f = jnp.tanh(h_fake)
        a_i = jnp.tanh(h_interp)

        d_real = jnp.sum(a_r * w2, axis=1, keepdims=True) + b           # (TB,1)
        d_fake = jnp.sum(a_f * w2, axis=1, keepdims=True) + b           # (TB,1)

        # Analytic grad of D(interp) wrt interp; squared norm via Gram matrix:
        #   grads = g_hidden @ W1^T ; ||grads||^2 = rowsum((g_hidden @ G) * g_hidden)
        g_hidden = (1.0 - a_i * a_i) * w2                                # (TB,Hp)
        t = jnp.dot(g_hidden, gram, preferred_element_type=jnp.float32)
        sq = jnp.sum(t * g_hidden, axis=1, keepdims=True)
        sq = jnp.maximum(sq, 0.0)               # f32 rounding guard before sqrt
        gp_term = (jnp.sqrt(sq) - 1.0) ** 2                              # (TB,1)

        def write(dr, df, gt):
            part_ref[0, 0] = jnp.sum(dr)
            part_ref[0, 1] = jnp.sum(df)
            part_ref[0, 2] = jnp.sum(gt)

        if needs_mask:
            # Only the last tile can be ragged; full tiles skip the mask math.
            last = pl.num_programs(0) - 1

            @pl.when(step != last)
            def _full_tile():
                write(d_real, d_fake, gp_term)

            @pl.when(step == last)
            def _ragged_tile():
                row = jax.lax.broadcasted_iota(jnp.int32, (tb, 1), 0) + step * tb
                valid = row < batch
                zero = jnp.zeros_like(d_real)
                write(jnp.where(valid, d_real, zero),
                      jnp.where(valid, d_fake, zero),
                      jnp.where(valid, gp_term, zero))
        else:
            write(d_real, d_fake, gp_term)

    return kernel


@functools.partial(jax.jit, static_argnames=("lambda_gp", "matmul_dtype"))
def wasserstein_gp(real, fake, alpha, w1, w2_row, bias, *,
                   lambda_gp, matmul_dtype=jnp.float32):
    """real/fake: (B, C, H, W), alpha: (B, 1). Returns (loss, wdist, gp)."""
    B = real.shape[0]
    F = int(np.prod(real.shape[1:]))
    H = w1.shape[1]
    Hp = _round_up(max(H, 128), 128)            # lane-dense hidden dim

    in_bytes = jnp.dtype(matmul_dtype).itemsize
    real_flat = real.reshape(B, F).astype(matmul_dtype)
    fake_flat = fake.reshape(B, F).astype(matmul_dtype)
    alpha = alpha.astype(jnp.float32)
    bias = bias.astype(jnp.float32)

    # Zero-pad hidden dim (padding contributes exactly zero everywhere).
    w1_f32 = jnp.pad(w1.astype(jnp.float32), ((0, 0), (0, Hp - H)))
    w2p = jnp.pad(w2_row.astype(jnp.float32), ((0, 0), (0, Hp - H)))

    # Gram matrix G = W1^T W1 stays f32 / HIGHEST (gnorm-sensitive path).
    gram = jax.lax.dot_general(
        w1_f32, w1_f32, dimension_numbers=(((0,), (0,)), ((), ())),
        precision=jax.lax.Precision.HIGHEST)
    w1p = w1_f32.astype(matmul_dtype)

    tb = _pick_batch_tile(B, F, in_bytes)
    num_tiles = (B + tb - 1) // tb
    needs_mask = (B % tb) != 0

    smem_scalar_in = pl.BlockSpec((1, 1), lambda i: (0, 0),
                                  memory_space=pltpu.MemorySpace.SMEM)

    def resident(shape):
        # Constant block index -> single buffer is enough; frees VMEM for TB.
        return pl.BlockSpec(shape, lambda i: (0, 0), pipeline_mode=pl.Buffered(1))

    # vmem limit ~= streamed double-buffered tiles + resident weights + intermediates.
    streamed_bytes = 2 * 2 * tb * F * in_bytes
    resident_bytes = (F * Hp + Hp * Hp + Hp) * 4
    interm_bytes = 10 * tb * Hp * 4
    vmem_limit = int(min(max(streamed_bytes + resident_bytes + interm_bytes
                             + (4 << 20), 32 << 20), 96 << 20))

    partials = pl.pallas_call(
        _wgan_gp_kernel(B, tb, needs_mask),
        out_shape=jax.ShapeDtypeStruct((num_tiles, 3), jnp.float32),
        grid=(num_tiles,),
        in_specs=[
            # Streamed (default double-buffering; bump to pl.Buffered(3) if the
            # DMA is still exposed at small F).
            pl.BlockSpec((tb, F), lambda i: (i, 0)),    # real
            pl.BlockSpec((tb, F), lambda i: (i, 0)),    # fake
            pl.BlockSpec((tb, 1), lambda i: (i, 0)),    # alpha
            resident((F, Hp)),                          # W1
            resident((1, Hp)),                          # w2
            resident((Hp, Hp)),                         # Gram
            smem_scalar_in,                             # bias
        ],
        # Per-tile partial sums -> no carried state -> batch axis is "parallel"
        # (both TensorCores on v7x); tiny reduction happens in the wrapper.
        out_specs=pl.BlockSpec((1, 3), lambda i: (i, 0),
                               memory_space=pltpu.MemorySpace.SMEM),
        compiler_params=pltpu.CompilerParams(
            dimension_semantics=("parallel",),
            vmem_limit_bytes=vmem_limit),
    )(real_flat, fake_flat, alpha, w1p, w2p, gram, bias)

    sums = jnp.sum(partials, axis=0)
    inv_b = 1.0 / B
    loss_real = sums[0] * inv_b
    loss_fake = sums[1] * inv_b
    gp = sums[2] * inv_b
    loss = -loss_real + loss_fake + gp * lambda_gp
    return loss, loss_real - loss_fake, gp


# ----------------------------- reference (pure JAX) -----------------------------
def _d_ref(x_flat, w1, w2_row, b):
    h = jnp.tanh(x_flat @ w1)
    return jnp.sum(h * w2_row, axis=1, keepdims=True) + b[0, 0]


def _ref_loss(real, fake, alpha, w1, w2_row, bias, lambda_gp):
    B = real.shape[0]
    F = int(np.prod(real.shape[1:]))
    real_f = real.reshape(B, F)
    fake_f = fake.reshape(B, F)
    interp = alpha * real_f + (1.0 - alpha) * fake_f

    d_sum = lambda x: jnp.sum(_d_ref(x, w1, w2_row, bias))
    grads = jax.grad(d_sum)(interp)                      # (B, F)
    gnorm = jnp.linalg.norm(grads, axis=1)
    gp = jnp.mean((gnorm - 1.0) ** 2)

    loss_real = jnp.mean(_d_ref(real_f, w1, w2_row, bias))
    loss_fake = jnp.mean(_d_ref(fake_f, w1, w2_row, bias))
    loss = -loss_real + loss_fake + gp * lambda_gp
    return loss, loss_real - loss_fake, gp


if __name__ == "__main__":
    key = jax.random.PRNGKey(0)
    k_real, k_fake, k_alpha, k_w1, k_w2, k_b = jax.random.split(key, 6)

    B, C, H, W = 2, 4, 16, 16
    F = C * H * W
    HID = 32
    lambda_gp = 10.0

    real = jax.random.normal(k_real, (B, C, H, W), dtype=jnp.float32)
    fake = jax.random.normal(k_fake, (B, C, H, W), dtype=jnp.float32)
    # alpha ~ U[0,1) per-sample, matches torch.rand(B,1,1,1) broadcast
    alpha = jax.random.uniform(k_alpha, (B, 1), dtype=jnp.float32)

    # deterministic synthetic discriminator parameters
    # TODO(synk): arbitrary `model` nn.Module cannot be translated; a fixed
    # analytic tanh-MLP discriminator is used instead.
    w1 = jax.random.normal(k_w1, (F, HID), dtype=jnp.float32) * 0.05
    w2_row = jax.random.normal(k_w2, (1, HID), dtype=jnp.float32) * 0.1
    bias = jax.random.normal(k_b, (1, 1), dtype=jnp.float32) * 0.1

    loss, wdist, gp = wasserstein_gp(real, fake, alpha, w1, w2_row, bias,
                                     lambda_gp=lambda_gp)
    jax.block_until_ready((loss, wdist, gp))

    ref_loss, ref_wdist, ref_gp = _ref_loss(real, fake, alpha, w1, w2_row, bias,
                                            lambda_gp)
    assert np.allclose(float(loss), float(ref_loss), atol=1e-3, rtol=1e-3)
    assert np.allclose(float(wdist), float(ref_wdist), atol=1e-3, rtol=1e-3)
    assert np.allclose(float(gp), float(ref_gp), atol=1e-3, rtol=1e-3)

    print("KERNEL_OK")
</pallas_src>

<mosaic_0001>
module attributes {stable_mosaic.version = 11 : i64} {
  func.func @kernel(%arg0: i32, %arg1: memref<2x1024xf32, #tpu.memory_space<vmem>>, %arg2: memref<2x1024xf32, #tpu.memory_space<vmem>>, %arg3: memref<2x1xf32, #tpu.memory_space<vmem>>, %arg4: memref<1024x128xf32, #tpu.memory_space<vmem>>, %arg5: memref<1x128xf32, #tpu.memory_space<vmem>>, %arg6: memref<128x128xf32, #tpu.memory_space<vmem>>, %arg7: memref<1x1xf32, #tpu.memory_space<smem>>, %arg8: memref<1x3xf32, #tpu.memory_space<smem>>) attributes {dimension_semantics = [#tpu.dimension_semantics<parallel>], iteration_bounds = array<i64: 1>, scalar_prefetch = 0 : i64, scratch_operands = 0 : i64, tpu.core_type = #tpu.core_type<tc>, window_params = [{transform_indices = @transform_0, window_bounds = array<i64: 2, 1024>}, {transform_indices = @transform_1, window_bounds = array<i64: 2, 1024>}, {transform_indices = @transform_2, window_bounds = array<i64: 2, 1>}, {pipeline_mode = #tpu.pipeline_mode<synchronous>, transform_indices = @transform_3, window_bounds = array<i64: 1024, 128>}, {pipeline_mode = #tpu.pipeline_mode<synchronous>, transform_indices = @transform_4, window_bounds = array<i64: 1, 128>}, {pipeline_mode = #tpu.pipeline_mode<synchronous>, transform_indices = @transform_5, window_bounds = array<i64: 128, 128>}, {transform_indices = @transform_6, window_bounds = array<i64: 1, 1>}, {transform_indices = @transform_7, window_bounds = array<i64: 1, 3>}]} {
    %c0 = arith.constant 0 : index
    %c0_0 = arith.constant 0 : index
    %0 = vector.load %arg1[%c0, %c0_0] : memref<2x1024xf32, #tpu.memory_space<vmem>>, vector<2x1024xf32>
    %c0_1 = arith.constant 0 : index
    %c0_2 = arith.constant 0 : index
    %1 = vector.load %arg2[%c0_1, %c0_2] : memref<2x1024xf32, #tpu.memory_space<vmem>>, vector<2x1024xf32>
    %c0_3 = arith.constant 0 : index
    %c0_4 = arith.constant 0 : index
    %2 = vector.load %arg3[%c0_3, %c0_4] : memref<2x1xf32, #tpu.memory_space<vmem>>, vector<2x1xf32>
    %c0_5 = arith.constant 0 : index
    %c0_6 = arith.constant 0 : index
    %3 = vector.load %arg4[%c0_5, %c0_6] : memref<1024x128xf32, #tpu.memory_space<vmem>>, vector<1024x128xf32>
    %c0_7 = arith.constant 0 : index
    %c0_8 = arith.constant 0 : index
    %4 = vector.load %arg5[%c0_7, %c0_8] : memref<1x128xf32, #tpu.memory_space<vmem>>, vector<1x128xf32>
    %c0_9 = arith.constant 0 : index
    %c0_10 = arith.constant 0 : index
    %5 = vector.load %arg6[%c0_9, %c0_10] : memref<128x128xf32, #tpu.memory_space<vmem>>, vector<128x128xf32>
    %c0_11 = arith.constant 0 : index
    %c0_12 = arith.constant 0 : index
    %6 = memref.load %arg7[%c0_11, %c0_12] : memref<1x1xf32, #tpu.memory_space<smem>>
    %cst = arith.constant dense<0.000000e+00> : vector<2x128xf32>
    %7 = tpu.matmul %0, %3, %cst {dimension_numbers = #tpu.dot_dimension_numbers<[1], [0], [0], [1], [0, 0, 1, 1], [], []>} : vector<2x1024xf32>, vector<1024x128xf32>, vector<2x128xf32> -> vector<2x128xf32>
    %cst_13 = arith.constant dense<0.000000e+00> : vector<2x128xf32>
    %8 = tpu.matmul %1, %3, %cst_13 {dimension_numbers = #tpu.dot_dimension_numbers<[1], [0], [0], [1], [0, 0, 1, 1], [], []>} : vector<2x1024xf32>, vector<1024x128xf32>, vector<2x128xf32> -> vector<2x128xf32>
    %9 = arith.subf %7, %8 : vector<2x128xf32>
    %10 = vector.broadcast %2 : vector<2x1xf32> to vector<2x128xf32>
    %11 = arith.mulf %10, %9 : vector<2x128xf32>
    %12 = arith.addf %8, %11 : vector<2x128xf32>
    %13 = math.tanh %7 : vector<2x128xf32>
    %14 = math.tanh %8 : vector<2x128xf32>
    %15 = math.tanh %12 : vector<2x128xf32>
    %16 = vector.broadcast %4 : vector<1x128xf32> to vector<2x128xf32>
    %17 = arith.mulf %13, %16 : vector<2x128xf32>
    %cst_14 = arith.constant dense<0.000000e+00> : vector<2xf32>
    %18 = vector.multi_reduction <add>, %17, %cst_14 [1] : vector<2x128xf32> to vector<2xf32>
    %19 = vector.shape_cast %18 : vector<2xf32> to vector<2x1xf32>
    %20 = vector.broadcast %6 : f32 to vector<2x1xf32>
    %21 = arith.addf %19, %20 : vector<2x1xf32>
    %22 = vector.broadcast %4 : vector<1x128xf32> to vector<2x128xf32>
    %23 = arith.mulf %14, %22 : vector<2x128xf32>
    %cst_15 = arith.constant dense<0.000000e+00> : vector<2xf32>
    %24 = vector.multi_reduction <add>, %23, %cst_15 [1] : vector<2x128xf32> to vector<2xf32>
    %25 = vector.shape_cast %24 : vector<2xf32> to vector<2x1xf32>
    %26 = vector.broadcast %6 : f32 to vector<2x1xf32>
    %27 = arith.addf %25, %26 : vector<2x1xf32>
    %28 = arith.mulf %15, %15 : vector<2x128xf32>
    %cst_16 = arith.constant 1.000000e+00 : f32
    %29 = vector.broadcast %cst_16 : f32 to vector<2x128xf32>
    %30 = arith.subf %29, %28 : vector<2x128xf32>
    %31 = vector.broadcast %4 : vector<1x128xf32> to vector<2x128xf32>
    %32 = arith.mulf %30, %31 : vector<2x128xf32>
    %cst_17 = arith.constant dense<0.000000e+00> : vector<2x128xf32>
    %33 = tpu.matmul %32, %5, %cst_17 {dimension_numbers = #tpu.dot_dimension_numbers<[1], [0], [0], [1], [0, 0, 1, 1], [], []>} : vector<2x128xf32>, vector<128x128xf32>, vector<2x128xf32> -> vector<2x128xf32>
    %34 = arith.mulf %33, %32 : vector<2x128xf32>
    %cst_18 = arith.constant dense<0.000000e+00> : vector<2xf32>
    %35 = vector.multi_reduction <add>, %34, %cst_18 [1] : vector<2x128xf32> to vector<2xf32>
    %36 = vector.shape_cast %35 : vector<2xf32> to vector<2x1xf32>
    %cst_19 = arith.constant 0.000000e+00 : f32
    %37 = vector.broadcast %cst_19 : f32 to vector<2x1xf32>
    %38 = arith.maximumf %36, %37 : vector<2x1xf32>
    %39 = math.sqrt %38 : vector<2x1xf32>
    %cst_20 = arith.constant 1.000000e+00 : f32
    %40 = vector.broadcast %cst_20 : f32 to vector<2x1xf32>
    %41 = arith.subf %39, %40 : vector<2x1xf32>
    %42 = arith.mulf %41, %41 : vector<2x1xf32>
    %43 = vector.shape_cast %21 : vector<2x1xf32> to vector<1x2x1xf32>
    %cst_21 = arith.constant dense<0.000000e+00> : vector<1xf32>
    %44 = vector.multi_reduction <add>, %43, %cst_21 [1, 2] : vector<1x2x1xf32> to vector<1xf32>
    %45 = vector.shape_cast %44 : vector<1xf32> to vector<1x1x1xf32>
    %46 = vector.extract %45[0, 0, 0] : f32 from vector<1x1x1xf32>
    %c0_22 = arith.constant 0 : index
    %c0_23 = arith.constant 0 : index
    %47 = memref.load %arg8[%c0_22, %c0_23] : memref<1x3xf32, #tpu.memory_space<smem>>
    memref.store %46, %arg8[%c0_22, %c0_23] : memref<1x3xf32, #tpu.memory_space<smem>>
    %48 = vector.shape_cast %27 : vector<2x1xf32> to vector<1x2x1xf32>
    %cst_24 = arith.constant dense<0.000000e+00> : vector<1xf32>
    %49 = vector.multi_reduction <add>, %48, %cst_24 [1, 2] : vector<1x2x1xf32> to vector<1xf32>
    %50 = vector.shape_cast %49 : vector<1xf32> to vector<1x1x1xf32>
    %51 = vector.extract %50[0, 0, 0] : f32 from vector<1x1x1xf32>
    %c0_25 = arith.constant 0 : index
    %c1 = arith.constant 1 : index
    %52 = memref.load %arg8[%c0_25, %c1] : memref<1x3xf32, #tpu.memory_space<smem>>
    memref.store %51, %arg8[%c0_25, %c1] : memref<1x3xf32, #tpu.memory_space<smem>>
    %53 = vector.shape_cast %42 : vector<2x1xf32> to vector<1x2x1xf32>
    %cst_26 = arith.constant dense<0.000000e+00> : vector<1xf32>
    %54 = vector.multi_reduction <add>, %53, %cst_26 [1, 2] : vector<1x2x1xf32> to vector<1xf32>
    %55 = vector.shape_cast %54 : vector<1xf32> to vector<1x1x1xf32>
    %56 = vector.extract %55[0, 0, 0] : f32 from vector<1x1x1xf32>
    %c0_27 = arith.constant 0 : index
    %c2 = arith.constant 2 : index
    %57 = memref.load %arg8[%c0_27, %c2] : memref<1x3xf32, #tpu.memory_space<smem>>
    memref.store %56, %arg8[%c0_27, %c2] : memref<1x3xf32, #tpu.memory_space<smem>>
    return
  }
  func.func @transform_0(%arg0: i32) -> (i32, i32) {
    %c0_i32 = arith.constant 0 : i32
    %c0_i32_0 = arith.constant 0 : i32
    return %arg0, %c0_i32 : i32, i32
  }
  func.func @transform_1(%arg0: i32) -> (i32, i32) {
    %c0_i32 = arith.constant 0 : i32
    %c0_i32_0 = arith.constant 0 : i32
    return %arg0, %c0_i32 : i32, i32
  }
  func.func @transform_2(%arg0: i32) -> (i32, i32) {
    %c0_i32 = arith.constant 0 : i32
    %c0_i32_0 = arith.constant 0 : i32
    return %arg0, %c0_i32 : i32, i32
  }
  func.func @transform_3(%arg0: i32) -> (i32, i32) {
    %c0_i32 = arith.constant 0 : i32
    %c0_i32_0 = arith.constant 0 : i32
    %c0_i32_1 = arith.constant 0 : i32
    return %c0_i32, %c0_i32_0 : i32, i32
  }
  func.func @transform_4(%arg0: i32) -> (i32, i32) {
    %c0_i32 = arith.constant 0 : i32
    %c0_i32_0 = arith.constant 0 : i32
    %c0_i32_1 = arith.constant 0 : i32
    return %c0_i32, %c0_i32_0 : i32, i32
  }
  func.func @transform_5(%arg0: i32) -> (i32, i32) {
    %c0_i32 = arith.constant 0 : i32
    %c0_i32_0 = arith.constant 0 : i32
    %c0_i32_1 = arith.constant 0 : i32
    return %c0_i32, %c0_i32_0 : i32, i32
  }
  func.func @transform_6(%arg0: i32) -> (i32, i32) {
    %c0_i32 = arith.constant 0 : i32
    %c0_i32_0 = arith.constant 0 : i32
    %c0_i32_1 = arith.constant 0 : i32
    return %c0_i32, %c0_i32_0 : i32, i32
  }
  func.func @transform_7(%arg0: i32) -> (i32, i32) {
    %c0_i32 = arith.constant 0 : i32
    %c0_i32_0 = arith.constant 0 : i32
    return %arg0, %c0_i32 : i32, i32
  }
}

</mosaic_0001>

<bundles_post_ra>
// kernel: wasserstein_gp.1
= control target key start
LH: loop header
LB: loop body
LE: loop exit
PB: predicated region body
PF: predicated region fallthrough
CT: control target
= control target key end

     0   :  { %v1367_v30 = vmov 1983009808   ;;  %v185_v32 = vlaneseq  ;;  %s2396_s0 = inlined_call_operand.vmem [shape: f32[2,1024], index: 0, kind: input, shape index: {}]   ;;  %s2397_s1 = inlined_call_operand.vmem [shape: f32[2,1024], index: 1, kind: input, shape index: {}]   ;;  %s2398_s2 = inlined_call_operand.vmem [shape: f32[2,1], index: 2, kind: input, shape index: {}]   ;;  %s2399_s3 = inlined_call_operand.vmem [shape: f32[1024,128], index: 3, kind: input, shape index: {}]   ;;  %s2400_s4 = inlined_call_operand.vmem [shape: f32[1,128], index: 4, kind: input, shape index: {}]   ;;  %s2401_s5 = inlined_call_operand.vmem [shape: f32[128,128], index: 5, kind: input, shape index: {}]   ;;  %s2402_s6 = inlined_call_operand.<no memory space> [shape: f32[1,1], index: 6, kind: input, shape index: {}]   ;;  %s2403_s7 = inlined_call_operand.vmem [shape: f32[1,3], index: 7, kind: output, shape index: {}]  }
   0x1   :  { %v1415_v0 = vld [vmem:[%s2399_s3 + $0xf8] sm:$0xff]  ;;  %v1437_v4 = vld [vmem:[%s2399_s3 + $0xf0] sm:$0xff]  ;;  %v1459_v8 = vld [vmem:[%s2399_s3 + $0xe8] sm:$0xff]  ;;  %v183_v31 = vunpack.c.l.s4 %v1367_v30 }
   0x2   :  { %v1420_v1 = vld [vmem:[%s2399_s3 + $0x1f8] sm:$0xff]  ;;  %997 = vmatprep.subr.mxu0 %v1415_v0  ;;  %v1442_v5 = vld [vmem:[%s2399_s3 + $0x1f0] sm:$0xff]  ;;  %v1466_v9 = vld [vmem:[%s2399_s3 + $0x1e8] sm:$0xff]  ;;  %v186_v42 = vshrl.u32 %v185_v32, 7 }
   0x3   :  { %v1425_v2 = vld [vmem:[%s2399_s3 + $0x78] sm:$0xff]  ;;  %1032 = vmatprep.subr.mxu1 %v1420_v1  ;;  %v1449_v6 = vld [vmem:[%s2399_s3 + $0x70] sm:$0xff]  ;;  %v1471_v10 = vld [vmem:[%s2399_s3 + $0x68] sm:$0xff]  ;;  %v184_v41 = vunpack.c.0.s8 %v183_v31 }
   0x4   :  { %v1432_v3 = vld [vmem:[%s2399_s3 + $0x178] sm:$0xff]  ;;  %998 = vmatpush3.msra.mxu0 %v1425_v2  ;;  %v1454_v7 = vld [vmem:[%s2399_s3 + $0x170] sm:$0xff]  ;;  %v1476_v11 = vld [vmem:[%s2399_s3 + $0x168] sm:$0xff] }
   0x5   :  { %1033 = vmatpush3.msra.mxu1 %v1432_v3  ;;  %999 = vmatprep.subr.mxu0 %v1437_v4  ;;  %v1483_v12 = vld [vmem:[%s2399_s3 + $0xe0] sm:$0xff]  ;;  %v1507_v16 = vld [vmem:[%s2399_s3 + $0xd8] sm:$0xff]  ;;  %v1531_v20 = vld [vmem:[%s2399_s3 + $0xd0] sm:$0xff]  ;;  %v1682_v51 = vsub.s32 %v184_v41, %v186_v42 }
   0x6   :  { %1034 = vmatprep.subr.mxu1 %v1442_v5  ;;  %1000 = vmatpush3.msra.mxu0 %v1449_v6  ;;  %v1488_v13 = vld [vmem:[%s2399_s3 + $0x1e0] sm:$0xff]  ;;  %v1512_v17 = vld [vmem:[%s2399_s3 + $0x1d8] sm:$0xff]  ;;  %v1536_v21 = vld [vmem:[%s2399_s3 + $0x1d0] sm:$0xff] }
   0x7   :  { %1035 = vmatpush3.msra.mxu1 %v1454_v7  ;;  %1001 = vmatprep.subr.mxu0 %v1459_v8  ;;  %v1495_v14 = vld [vmem:[%s2399_s3 + $0x60] sm:$0xff]  ;;  %v1519_v18 = vld [vmem:[%s2399_s3 + $0x58] sm:$0xff]  ;;  %v1543_v22 = vld [vmem:[%s2399_s3 + $0x50] sm:$0xff] }
   0x8   :  { %1036 = vmatprep.subr.mxu1 %v1466_v9  ;;  %v1500_v15 = vld [vmem:[%s2399_s3 + $0x160] sm:$0xff]  ;;  %1002 = vmatpush3.msra.mxu0 %v1471_v10  ;;  %v1524_v19 = vld [vmem:[%s2399_s3 + $0x158] sm:$0xff]  ;;  %v1548_v23 = vld [vmem:[%s2399_s3 + $0x150] sm:$0xff] }
   0x9   :  { %1037 = vmatpush3.msra.mxu1 %v1476_v11  ;;  %1003 = vmatprep.subr.mxu0 %v1483_v12  ;;  %v1555_v24 = vld [vmem:[%s2399_s3 + $0xc8] sm:$0xff]  ;;  %v1579_v28 = vld [vmem:[%s2399_s3 + $0xc0] sm:$0xff]  ;;  %v1603_v35 = vld [vmem:[%s2399_s3 + $0xb8] sm:$0xff] }
   0xa   :  { %1038 = vmatprep.subr.mxu1 %v1488_v13  ;;  %1004 = vmatpush3.msra.mxu0 %v1495_v14  ;;  %v1560_v25 = vld [vmem:[%s2399_s3 + $0x1c8] sm:$0xff]  ;;  %v1584_v29 = vld [vmem:[%s2399_s3 + $0x1c0] sm:$0xff]  ;;  %v1608_v36 = vld [vmem:[%s2399_s3 + $0x1b8] sm:$0xff] }
   0xb   :  { %1039 = vmatpush3.msra.mxu1 %v1500_v15  ;;  %1005 = vmatprep.subr.mxu0 %v1507_v16  ;;  %v1567_v26 = vld [vmem:[%s2399_s3 + $0x48] sm:$0xff]  ;;  %v1591_v33 = vld [vmem:[%s2399_s3 + $0x40] sm:$0xff]  ;;  %v1615_v37 = vld [vmem:[%s2399_s3 + $0x38] sm:$0xff] }
   0xc   :  { %1040 = vmatprep.subr.mxu1 %v1512_v17  ;;  %1006 = vmatpush3.msra.mxu0 %v1519_v18  ;;  %v1572_v27 = vld [vmem:[%s2399_s3 + $0x148] sm:$0xff]  ;;  %v1596_v34 = vld [vmem:[%s2399_s3 + $0x140] sm:$0xff]  ;;  %v1620_v38 = vld [vmem:[%s2399_s3 + $0x138] sm:$0xff] }
   0xd   :  { %1041 = vmatpush3.msra.mxu1 %v1524_v19  ;;  %1007 = vmatprep.subr.mxu0 %v1531_v20  ;;  %v1627_v39 = vld [vmem:[%s2399_s3 + $0xb0] sm:$0xff]  ;;  %v1651_v45 = vld [vmem:[%s2399_s3 + $0xa8] sm:$0xff]  ;;  %v1675_v49 = vld [vmem:[%s2399_s3 + $0xa0] sm:$0xff] }
   0xe   :  { %1042 = vmatprep.subr.mxu1 %v1536_v21  ;;  %1008 = vmatpush3.msra.mxu0 %v1543_v22  ;;  %v1632_v40 = vld [vmem:[%s2399_s3 + $0x1b0] sm:$0xff]  ;;  %v1656_v46 = vld [vmem:[%s2399_s3 + $0x1a8] sm:$0xff]  ;;  %v1680_v50 = vld [vmem:[%s2399_s3 + $0x1a0] sm:$0xff] }
   0xf   :  { %1043 = vmatpush3.msra.mxu1 %v1548_v23  ;;  %1009 = vmatprep.subr.mxu0 %v1555_v24  ;;  %v1639_v43 = vld [vmem:[%s2399_s3 + $0x30] sm:$0xff]  ;;  %v1663_v47 = vld [vmem:[%s2399_s3 + $0x28] sm:$0xff]  ;;  %v1689_v52 = vld [vmem:[%s2399_s3 + $0x20] sm:$0xff] }
  0x10   :  { %1044 = vmatprep.subr.mxu1 %v1560_v25  ;;  %1010 = vmatpush3.msra.mxu0 %v1567_v26  ;;  %v1644_v44 = vld [vmem:[%s2399_s3 + $0x130] sm:$0xff]  ;;  %v1668_v48 = vld [vmem:[%s2399_s3 + $0x128] sm:$0xff]  ;;  %v1694_v53 = vld [vmem:[%s2399_s3 + $0x120] sm:$0xff] }
  0x11   :  { %1045 = vmatpush3.msra.mxu1 %v1572_v27  ;;  %1011 = vmatprep.subr.mxu0 %v1579_v28  ;;  %v28_v54 = vld [vmem:[%s2396_s0] sm:$0xff]  ;;  %v1704_v55 = vld [vmem:[%s2399_s3 + $0x98] sm:$0xff]  ;;  %v1728_v60 = vld [vmem:[%s2399_s3 + $0x90] sm:$0xff] }
  0x12   :  { %1046 = vmatprep.subr.mxu1 %v1584_v29  ;;  %1012 = vmatpush3.msra.mxu0 %v1591_v33  ;;  %v1709_v56 = vld [vmem:[%s2399_s3 + $0x198] sm:$0xff]  ;;  %v181_v57 = vcombine.high %v28_v54, %v28_v54  ;;  %2474 = vst [vmem:[#allocation7_spill] sm:$0xff] %v1728_v60  ;;  %v1733_v61 = vld [vmem:[%s2399_s3 + $0x190] sm:$0xff]  ;;  %v188_v62 = vrot.slane %v28_v54, %v1682_v51  ;;  %v1754_v32 = vld [vmem:[%s2399_s3 + $0x88] sm:$0xff] }
  0x13   :  { %1047 = vmatpush3.msra.mxu1 %v1596_v34  ;;  %1013 = vmatprep.subr.mxu0 %v1603_v35  ;;  %v1716_v58 = vld [vmem:[%s2399_s3 + $0x18] sm:$0xff]  ;;  %2475 = vst [vmem:[#allocation8_spill] sm:$0xff] %v1733_v61  ;;  %v1741_v63 = vld [vmem:[%s2399_s3 + $0x10] sm:$0xff]  ;;  %2478 = vst [vmem:[#allocation11_spill] sm:$0xff] %v1754_v32 }
  0x14   :  { %1048 = vmatprep.subr.mxu1 %v1608_v36  ;;  %1014 = vmatpush3.msra.mxu0 %v1615_v37  ;;  %v1721_v59 = vld [vmem:[%s2399_s3 + $0x118] sm:$0xff]  ;;  %2476 = vst [vmem:[#allocation9_spill] sm:$0xff] %v1741_v63  ;;  %v1746_v30 = vld [vmem:[%s2399_s3 + $0x110] sm:$0xff]  ;;  %v195_v31 = vrot.slane %v181_v57, %v1682_v51  ;;  %v1759_v41 = vld [vmem:[%s2399_s3 + $0x188] sm:$0xff] }
  0x15   :  { %1049 = vmatpush3.msra.mxu1 %v1620_v38  ;;  %1015 = vmatprep.subr.mxu0 %v1627_v39  ;;  %2473 = vst [vmem:[#allocation6_spill] sm:$0xff] %v1721_v59  ;;  %2477 = vst [vmem:[#allocation10_spill] sm:$0xff] %v1746_v30  ;;  %v1766_v42 = vld [vmem:[%s2399_s3 + $0x8] sm:$0xff]  ;;  %v1778_v57 = vld [vmem:[%s2399_s3 + $0x80] sm:$0xff] }
  0x16   :  { %1050 = vmatprep.subr.mxu1 %v1632_v40  ;;  %1016 = vmatpush3.msra.mxu0 %v1639_v43  ;;  %2479 = vst [vmem:[#allocation12_spill] sm:$0xff] %v1759_v41  ;;  %2480 = vst [vmem:[#allocation13_spill] sm:$0xff] %v1766_v42  ;;  %v1771_v54 = vld [vmem:[%s2399_s3 + $0x108] sm:$0xff] }
  0x17   :  { %1051 = vmatpush3.msra.mxu1 %v1644_v44  ;;  %1017 = vmatprep.subr.mxu0 %v1651_v45  ;;  %2481 = vst [vmem:[#allocation14_spill] sm:$0xff] %v1771_v54  ;;  %2482 = vst [vmem:[#allocation15_spill] sm:$0xff] %v1778_v57 }
  0x18   :  { %1052 = vmatprep.subr.mxu1 %v1656_v46  ;;  %1018 = vmatpush3.msra.mxu0 %v1663_v47 }
  0x19   :  { %1053 = vmatpush3.msra.mxu1 %v1668_v48  ;;  %1019 = vmatprep.subr.mxu0 %v1675_v49 }
  0x1a   :  { %1054 = vmatprep.subr.mxu1 %v1680_v50  ;;  %1020 = vmatpush3.msra.mxu0 %v1689_v52 }
  0x1b   :  { %1055 = vmatpush3.msra.mxu1 %v1694_v53  ;;  %1021 = vmatprep.subr.mxu0 %v1704_v55 }
  0x1c   :  { %1056 = vmatprep.subr.mxu1 %v1709_v56  ;;  %1022 = vmatpush3.msra.mxu0 %v1716_v58 }
  0x1d   :  { %1057 = vmatpush3.msra.mxu1 %v1721_v59  ;;  %1023 = vmatprep.subr.mxu0 %v1728_v60  ;;  %v196_v60 = vcombine.high %v188_v62, %v188_v62  ;;  %v1797_v59 = vld [vmem:[%s2399_s3 + $0x100] sm:$0xff] }
  0x1e   :  { %1058 = vmatprep.subr.mxu1 %v1733_v61  ;;  %1024 = vmatpush3.msra.mxu0 %v1741_v63  ;;  %v1783_v61 = vld [vmem:[%s2399_s3 + $0x180] sm:$0xff]  ;;  %2485 = vst [vmem:[#allocation18_spill] sm:$0xff] %v1797_v59 }
  0x1f   :  { %1059 = vmatpush3.msra.mxu1 %v1746_v30  ;;  %2483 = vst [vmem:[#allocation16_spill] sm:$0xff] %v1783_v61  ;;  %1025 = vmatprep.subr.mxu0 %v1754_v32  ;;  %v1790_v63 = vld [vmem:[%s2399_s3] sm:$0xff]  ;;  %v197_v30 = vcombine.high %v195_v31, %v195_v31 }
  0x20   :  { %1060 = vmatprep.subr.mxu1 %v1759_v41  ;;  %2484 = vst [vmem:[#allocation17_spill] sm:$0xff] %v1790_v63  ;;  %1026 = vmatpush3.msra.mxu0 %v1766_v42  ;;  %v1805_v41 = vld [vmem:[%s2399_s3 + $0x2f8] sm:$0xff] }
  0x21   :  { %1061 = vmatpush3.msra.mxu1 %v1771_v54  ;;  %1027 = vmatprep.subr.mxu0 %v1778_v57  ;;  %2486 = vst [vmem:[#allocation19_spill] sm:$0xff] %v1805_v41  ;;  %v1810_v54 = vld [vmem:[%s2399_s3 + $0x3f8] sm:$0xff] }
  0x22   :  { %1062 = vmatprep.subr.mxu1 %v1783_v61  ;;  %1028 = vmatpush3.msra.mxu0 %v1790_v63  ;;  %2487 = vst [vmem:[#allocation20_spill] sm:$0xff] %v1810_v54  ;;  %v1816_v61 = vld [vmem:[%s2399_s3 + $0x278] sm:$0xff]  ;;  %v1826_v63 = vld [vmem:[%s2399_s3 + $0x2f0] sm:$0xff] }
  0x23   :  { %287 = vmatprep.mubr.f32.mxu0 %v196_v60  ;;  %1063 = vmatpush3.msra.mxu1 %v1797_v59  ;;  %2488 = vst [vmem:[#allocation21_spill] sm:$0xff] %v1816_v61  ;;  %v1821_v60 = vld [vmem:[%s2399_s3 + $0x378] sm:$0xff]  ;;  %2490 = vst [vmem:[#allocation23_spill] sm:$0xff] %v1826_v63  ;;  %v1838_v59 = vld [vmem:[%s2399_s3 + $0x270] sm:$0xff] }
  0x24   :  { %357 = vmatprep.mubr.f32.mxu1 %v197_v30  ;;  %2489 = vst [vmem:[#allocation22_spill] sm:$0xff] %v1821_v60  ;;  %288 = vmatmul.mubr.f32.vlgmr.msra.gmra.mxu0 %v188_v62  ;;  %v1831_v30 = vld [vmem:[%s2399_s3 + $0x3f0] sm:$0xff]  ;;  %2492 = vst [vmem:[#allocation25_spill] sm:$0xff] %v1838_v59 }
  0x25   :  { %358 = vmatmul.mubr.f32.vlgmr.msra.gmra.mxu1 %v195_v31  ;;  %2491 = vst [vmem:[#allocation24_spill] sm:$0xff] %v1831_v30  ;;  %1067 = vmatprep.subr.mxu0 %v1805_v41  ;;  %v1843_v62 = vld [vmem:[%s2399_s3 + $0x370] sm:$0xff]  ;;  %v1850_v31 = vld [vmem:[%s2399_s3 + $0x2e8] sm:$0xff] }
  0x26   :  { %1102 = vmatprep.subr.mxu1 %v1810_v54  ;;  %2493 = vst [vmem:[#allocation26_spill] sm:$0xff] %v1843_v62  ;;  %1068 = vmatpush3.msra.mxu0 %v1816_v61  ;;  %2494 = vst [vmem:[#allocation27_spill] sm:$0xff] %v1850_v31  ;;  %v1855_v54 = vld [vmem:[%s2399_s3 + $0x3e8] sm:$0xff] }
  0x27   :  { %1103 = vmatpush3.msra.mxu1 %v1821_v60  ;;  %2495 = vst [vmem:[#allocation28_spill] sm:$0xff] %v1855_v54  ;;  %1069 = vmatprep.subr.mxu0 %v1826_v63  ;;  %v1862_v61 = vld [vmem:[%s2399_s3 + $0x268] sm:$0xff]  ;;  %v1874_v63 = vld [vmem:[%s2399_s3 + $0x2e0] sm:$0xff] }
  0x28   :  { %1104 = vmatprep.subr.mxu1 %v1831_v30  ;;  %2496 = vst [vmem:[#allocation29_spill] sm:$0xff] %v1862_v61  ;;  %v1867_v60 = vld [vmem:[%s2399_s3 + $0x368] sm:$0xff]  ;;  %1070 = vmatpush3.msra.mxu0 %v1838_v59  ;;  %2498 = vst [vmem:[#allocation31_spill] sm:$0xff] %v1874_v63  ;;  %v1879_v30 = vld [vmem:[%s2399_s3 + $0x3e0] sm:$0xff] }
  0x29   :  { %2497 = vst [vmem:[#allocation30_spill] sm:$0xff] %v1867_v60  ;;  %1105 = vmatpush3.msra.mxu1 %v1843_v62  ;;  %2499 = vst [vmem:[#allocation32_spill] sm:$0xff] %v1879_v30  ;;  %1071 = vmatprep.subr.mxu0 %v1850_v31  ;;  %v1886_v59 = vld [vmem:[%s2399_s3 + $0x260] sm:$0xff]  ;;  %v1898_v31 = vld [vmem:[%s2399_s3 + $0x2d8] sm:$0xff] }
  0x2a   :  { %1106 = vmatprep.subr.mxu1 %v1855_v54  ;;  %2500 = vst [vmem:[#allocation33_spill] sm:$0xff] %v1886_v59  ;;  %v1891_v62 = vld [vmem:[%s2399_s3 + $0x360] sm:$0xff]  ;;  %1072 = vmatpush3.msra.mxu0 %v1862_v61  ;;  %2502 = vst [vmem:[#allocation35_spill] sm:$0xff] %v1898_v31  ;;  %v1903_v54 = vld [vmem:[%s2399_s3 + $0x3d8] sm:$0xff] }
  0x2b   :  { %2501 = vst [vmem:[#allocation34_spill] sm:$0xff] %v1891_v62  ;;  %1107 = vmatpush3.msra.mxu1 %v1867_v60  ;;  %2503 = vst [vmem:[#allocation36_spill] sm:$0xff] %v1903_v54  ;;  %1073 = vmatprep.subr.mxu0 %v1874_v63  ;;  %v1910_v61 = vld [vmem:[%s2399_s3 + $0x258] sm:$0xff]  ;;  %v1922_v63 = vld [vmem:[%s2399_s3 + $0x2d0] sm:$0xff] }
  0x2c   :  { %1108 = vmatprep.subr.mxu1 %v1879_v30  ;;  %2504 = vst [vmem:[#allocation37_spill] sm:$0xff] %v1910_v61  ;;  %v1915_v60 = vld [vmem:[%s2399_s3 + $0x358] sm:$0xff]  ;;  %1074 = vmatpush3.msra.mxu0 %v1886_v59  ;;  %2506 = vst [vmem:[#allocation39_spill] sm:$0xff] %v1922_v63  ;;  %v1927_v30 = vld [vmem:[%s2399_s3 + $0x3d0] sm:$0xff] }
  0x2d   :  { %2505 = vst [vmem:[#allocation38_spill] sm:$0xff] %v1915_v60  ;;  %1109 = vmatpush3.msra.mxu1 %v1891_v62  ;;  %2507 = vst [vmem:[#allocation40_spill] sm:$0xff] %v1927_v30  ;;  %1075 = vmatprep.subr.mxu0 %v1898_v31  ;;  %v1934_v59 = vld [vmem:[%s2399_s3 + $0x250] sm:$0xff]  ;;  %v1946_v31 = vld [vmem:[%s2399_s3 + $0x2c8] sm:$0xff] }
  0x2e   :  { %1110 = vmatprep.subr.mxu1 %v1903_v54  ;;  %2508 = vst [vmem:[#allocation41_spill] sm:$0xff] %v1934_v59  ;;  %v1939_v62 = vld [vmem:[%s2399_s3 + $0x350] sm:$0xff]  ;;  %1076 = vmatpush3.msra.mxu0 %v1910_v61  ;;  %2510 = vst [vmem:[#allocation43_spill] sm:$0xff] %v1946_v31  ;;  %v1951_v54 = vld [vmem:[%s2399_s3 + $0x3c8] sm:$0xff] }
  0x2f   :  { %2509 = vst [vmem:[#allocation42_spill] sm:$0xff] %v1939_v62  ;;  %1111 = vmatpush3.msra.mxu1 %v1915_v60  ;;  %2511 = vst [vmem:[#allocation44_spill] sm:$0xff] %v1951_v54 }
  0x30   :  { %13 = vsyncpa [#allocation4], 0  ;;  %1077 = vmatprep.subr.mxu0 %v1922_v63  ;;  %1112 = vmatprep.subr.mxu1 %v1927_v30  ;;  %v1958_v61 = vld [vmem:[%s2399_s3 + $0x248] sm:$0xff]  ;;  %v1970_v63 = vld [vmem:[%s2399_s3 + $0x2c0] sm:$0xff]  ;;  %vm1370_vm0 = vmmov 0   ;;  %vm845_vm1 = vcmask 1041408  }
  0x31   :  { %2512 = vst [vmem:[#allocation45_spill] sm:$0xff] %v1958_v61  ;;  %v1963_v60 = vld [vmem:[%s2399_s3 + $0x348] sm:$0xff]  ;;  %1078 = vmatpush3.msra.mxu0 %v1934_v59  ;;  %1113 = vmatpush3.msra.mxu1 %v1939_v62  ;;  %2514 = vst [vmem:[#allocation47_spill] sm:$0xff] %v1970_v63  ;;  %v1975_v30 = vld [vmem:[%s2399_s3 + $0x3c0] sm:$0xff]  ;;  %vm943_vm2 = vcmask 1024  }
  0x32   :  { %2513 = vst [vmem:[#allocation46_spill] sm:$0xff] %v1963_v60  ;;  %2515 = vst [vmem:[#allocation48_spill] sm:$0xff] %v1975_v30  ;;  %1079 = vmatprep.subr.mxu0 %v1946_v31  ;;  %1114 = vmatprep.subr.mxu1 %v1951_v54  ;;  %v1982_v59 = vld [vmem:[%s2399_s3 + $0x240] sm:$0xff]  ;;  %v1994_v31 = vld [vmem:[%s2399_s3 + $0x2b8] sm:$0xff] }
  0x33   :  { %2516 = vst [vmem:[#allocation49_spill] sm:$0xff] %v1982_v59  ;;  %v1987_v62 = vld [vmem:[%s2399_s3 + $0x340] sm:$0xff]  ;;  %1080 = vmatpush3.msra.mxu0 %v1958_v61  ;;  %1115 = vmatpush3.msra.mxu1 %v1963_v60  ;;  %2518 = vst [vmem:[#allocation51_spill] sm:$0xff] %v1994_v31  ;;  %v1999_v54 = vld [vmem:[%s2399_s3 + $0x3b8] sm:$0xff] }
  0x34   :  { %2517 = vst [vmem:[#allocation50_spill] sm:$0xff] %v1987_v62  ;;  %2519 = vst [vmem:[#allocation52_spill] sm:$0xff] %v1999_v54  ;;  %1081 = vmatprep.subr.mxu0 %v1970_v63  ;;  %1116 = vmatprep.subr.mxu1 %v1975_v30  ;;  %v2006_v61 = vld [vmem:[%s2399_s3 + $0x238] sm:$0xff]  ;;  %v2018_v63 = vld [vmem:[%s2399_s3 + $0x2b0] sm:$0xff] }
  0x35   :  { %2520 = vst [vmem:[#allocation53_spill] sm:$0xff] %v2006_v61  ;;  %v2011_v60 = vld [vmem:[%s2399_s3 + $0x338] sm:$0xff]  ;;  %1082 = vmatpush3.msra.mxu0 %v1982_v59  ;;  %1117 = vmatpush3.msra.mxu1 %v1987_v62  ;;  %2522 = vst [vmem:[#allocation55_spill] sm:$0xff] %v2018_v63  ;;  %v2023_v30 = vld [vmem:[%s2399_s3 + $0x3b0] sm:$0xff] }
  0x36   :  { %2521 = vst [vmem:[#allocation54_spill] sm:$0xff] %v2011_v60  ;;  %2523 = vst [vmem:[#allocation56_spill] sm:$0xff] %v2023_v30  ;;  %1083 = vmatprep.subr.mxu0 %v1994_v31  ;;  %1118 = vmatprep.subr.mxu1 %v1999_v54  ;;  %v2030_v59 = vld [vmem:[%s2399_s3 + $0x230] sm:$0xff]  ;;  %v2042_v31 = vld [vmem:[%s2399_s3 + $0x2a8] sm:$0xff] }
  0x37   :  { %2524 = vst [vmem:[#allocation57_spill] sm:$0xff] %v2030_v59  ;;  %v2035_v62 = vld [vmem:[%s2399_s3 + $0x330] sm:$0xff]  ;;  %1084 = vmatpush3.msra.mxu0 %v2006_v61  ;;  %1119 = vmatpush3.msra.mxu1 %v2011_v60  ;;  %2526 = vst [vmem:[#allocation59_spill] sm:$0xff] %v2042_v31  ;;  %v2047_v54 = vld [vmem:[%s2399_s3 + $0x3a8] sm:$0xff] }
  0x38   :  { %2525 = vst [vmem:[#allocation58_spill] sm:$0xff] %v2035_v62  ;;  %2527 = vst [vmem:[#allocation60_spill] sm:$0xff] %v2047_v54  ;;  %1085 = vmatprep.subr.mxu0 %v2018_v63  ;;  %1120 = vmatprep.subr.mxu1 %v2023_v30  ;;  %v2054_v61 = vld [vmem:[%s2399_s3 + $0x228] sm:$0xff]  ;;  %v2069_v30 = vld [vmem:[%s2399_s3 + $0x2a0] sm:$0xff] }
  0x39   :  { %2528 = vst [vmem:[#allocation61_spill] sm:$0xff] %v2054_v61  ;;  %v2059_v60 = vld [vmem:[%s2399_s3 + $0x328] sm:$0xff]  ;;  %1086 = vmatpush3.msra.mxu0 %v2030_v59  ;;  %1121 = vmatpush3.msra.mxu1 %v2035_v62  ;;  %2530 = vst [vmem:[#allocation63_spill] sm:$0xff] %v2069_v30  ;;  %v2074_v63 = vld [vmem:[%s2399_s3 + $0x3a0] sm:$0xff] }
  0x3a   :  { %2529 = vst [vmem:[#allocation62_spill] sm:$0xff] %v2059_v60  ;;  %v29_v41 = vld [vmem:[%s2396_s0 + $0x8] sm:$0xff]  ;;  %2531 = vst [vmem:[#allocation64_spill] sm:$0xff] %v2074_v63  ;;  %1087 = vmatprep.subr.mxu0 %v2042_v31  ;;  %1122 = vmatprep.subr.mxu1 %v2047_v54  ;;  %v2081_v59 = vld [vmem:[%s2399_s3 + $0x220] sm:$0xff]  ;;  %s986_s0 = sshll.u32 %s2403_s7, 4  ;;  %s987_s0 = int_to_ptr.vmem [resolvable:$true] %s986_s0 }
  0x3b   :  { %2532 = vst [vmem:[#allocation65_spill] sm:$0xff] %v2081_v59  ;;  %v2086_v62 = vld [vmem:[%s2399_s3 + $0x320] sm:$0xff]  ;;  %1088 = vmatpush3.msra.mxu0 %v2054_v61  ;;  %1123 = vmatpush3.msra.mxu1 %v2059_v60  ;;  %v2093_v31 = vld [vmem:[%s2399_s3 + $0x298] sm:$0xff]  ;;  %v198_v57 = vcombine.high %v29_v41, %v29_v41  ;;  %v205_v42 = vrot.slane %v29_v41, %v1682_v51  ;;  %v2142_v41 = vld [vmem:[%s2399_s3 + $0x288] sm:$0xff]  ;;  %s1353_s20 = scalar_lea.vmem %s987_s0, 16  ;;  %p1358_p1 = scmp.lt.s32.totalorder %s987_s0, %s987_s0 }
  0x3c   :  { %2533 = vst [vmem:[#allocation66_spill] sm:$0xff] %v2086_v62  ;;  %2534 = vst [vmem:[#allocation67_spill] sm:$0xff] %v2093_v31  ;;  %v2098_v54 = vld [vmem:[%s2399_s3 + $0x398] sm:$0xff]  ;;  %1089 = vmatprep.subr.mxu0 %v2069_v30  ;;  %1124 = vmatprep.subr.mxu1 %v2074_v63  ;;  %v2117_v30 = vld [vmem:[%s2399_s3 + $0x290] sm:$0xff]  ;;  %p1354_p0 = scmp.ne.s32.totalorder %s987_s0, %s1353_s20  ;;  %p1359_p2 = scmp.lt.s32.totalorder %s1353_s20, %s1353_s20 }
  0x3d   :  { %2535 = vst [vmem:[#allocation68_spill] sm:$0xff] %v2098_v54  ;;  %v2105_v61 = vld [vmem:[%s2399_s3 + $0x218] sm:$0xff]  ;;  %1090 = vmatpush3.msra.mxu0 %v2081_v59  ;;  %1125 = vmatpush3.msra.mxu1 %v2086_v62  ;;  %2538 = vst [vmem:[#allocation71_spill] sm:$0xff] %v2117_v30  ;;  %v2122_v63 = vld [vmem:[%s2399_s3 + $0x390] sm:$0xff] }
  0x3e   :  { %2536 = vst [vmem:[#allocation69_spill] sm:$0xff] %v2105_v61  ;;  %v2110_v60 = vld [vmem:[%s2399_s3 + $0x318] sm:$0xff]  ;;  %2539 = vst [vmem:[#allocation72_spill] sm:$0xff] %v2122_v63  ;;  %1091 = vmatprep.subr.mxu0 %v2093_v31  ;;  %1126 = vmatprep.subr.mxu1 %v2098_v54  ;;  %v2130_v62 = vld [vmem:[%s2399_s3 + $0x210] sm:$0xff]  ;;  %v212_v31 = vrot.slane %v198_v57, %v1682_v51  ;;  %p1360_p3 = por %p1359_p2, %p1358_p1 }
  0x3f   :  { %2537 = vst [vmem:[#allocation70_spill] sm:$0xff] %v2110_v60  ;;  %2540 = vst [vmem:[#allocation73_spill] sm:$0xff] %v2130_v62  ;;  %v2135_v59 = vld [vmem:[%s2399_s3 + $0x310] sm:$0xff]  ;;  %1092 = vmatpush3.msra.mxu0 %v2105_v61  ;;  %1127 = vmatpush3.msra.mxu1 %v2110_v60  ;;  %v2147_v54 = vld [vmem:[%s2399_s3 + $0x388] sm:$0xff] }
  0x40   :  { %2541 = vst [vmem:[#allocation74_spill] sm:$0xff] %v2135_v59  ;;  %1093 = vmatprep.subr.mxu0 %v2117_v30  ;;  %1128 = vmatprep.subr.mxu1 %v2122_v63  ;;  %v2155_v60 = vld [vmem:[%s2399_s3 + $0x208] sm:$0xff]  ;;  %v2167_v57 = vld [vmem:[%s2399_s3 + $0x280] sm:$0xff]  ;;  %v213_v30 = vcombine.high %v205_v42, %v205_v42  ;;  %v214_v32 = vcombine.high %v212_v31, %v212_v31  ;;  %p1361_p4 = pnand %p1360_p3, %p1354_p0 }
  0x41   :  { %v2160_v61 = vld [vmem:[%s2399_s3 + $0x308] sm:$0xff]  ;;  %1094 = vmatpush3.msra.mxu0 %v2130_v62  ;;  %1129 = vmatpush3.msra.mxu1 %v2135_v59  ;;  %v2172_v63 = vld [vmem:[%s2399_s3 + $0x380] sm:$0xff] }
  0x42   :  { %1095 = vmatprep.subr.mxu0 %v2142_v41  ;;  %1130 = vmatprep.subr.mxu1 %v2147_v54  ;;  %v2179_v62 = vld [vmem:[%s2399_s3 + $0x200] sm:$0xff] }
  0x43   :  { %1096 = vmatpush3.msra.mxu0 %v2155_v60  ;;  %1131 = vmatpush3.msra.mxu1 %v2160_v61  ;;  %v2186_v59 = vld [vmem:[%s2399_s3 + $0x300] sm:$0xff] }
  0x44   :  { %1097 = vmatprep.subr.mxu0 %v2167_v57  ;;  %1132 = vmatprep.subr.mxu1 %v2172_v63 }
  0x45   :  { %1098 = vmatpush3.msra.mxu0 %v2179_v62  ;;  %427 = vmatprep.mubr.f32.mxu0 %v213_v30  ;;  %v2589_v30 = vld [vmem:[#allocation53_spill] sm:$0xff] }
  0x46   :  { %1133 = vmatpush3.msra.mxu1 %v2186_v59  ;;  %428 = vmatmul.mubr.f32.vlgmr.msra.gmra.mxu0 %v205_v42  ;;  %v2588_v42 = vld [vmem:[#allocation52_spill] sm:$0xff] }
  0x47   :  { %497 = vmatprep.mubr.f32.mxu1 %v214_v32  ;;  %1137 = vmatprep.subr.mxu0 %v1415_v0  ;;  %v30_v0 = vld [vmem:[%s2397_s1] sm:$0xff]  ;;  %v2587_v32 = vld [vmem:[#allocation51_spill] sm:$0xff] }
  0x48   :  { %1172 = vmatprep.subr.mxu1 %v1420_v1  ;;  %498 = vmatmul.mubr.f32.vlgmr.msra.gmra.mxu1 %v212_v31  ;;  %v505_v1 = vcombine.high %v30_v0, %v30_v0  ;;  %v2590_v31 = vld [vmem:[#allocation54_spill] sm:$0xff] }
  0x49   :  { %1138 = vmatpush3.msra.mxu0 %v1425_v2  ;;  %1173 = vmatpush3.msra.mxu1 %v1432_v3  ;;  %v512_v2 = vrot.slane %v30_v0, %v1682_v51  ;;  %v31_v0 = vld [vmem:[%s2397_s1 + $0x8] sm:$0xff] }
  0x4a   :  { %1139 = vmatprep.subr.mxu0 %v1437_v4  ;;  %1174 = vmatprep.subr.mxu1 %v1442_v5  ;;  %v519_v3 = vrot.slane %v505_v1, %v1682_v51  ;;  %v2542_v4 = vld [vmem:[#allocation6_spill] sm:$0xff]  ;;  %v2543_v5 = vld [vmem:[#allocation7_spill] sm:$0xff] }
  0x4b   :  { %1140 = vmatpush3.msra.mxu0 %v1449_v6  ;;  %1175 = vmatpush3.msra.mxu1 %v1454_v7  ;;  %v2544_v6 = vld [vmem:[#allocation8_spill] sm:$0xff]  ;;  %v2545_v7 = vld [vmem:[#allocation9_spill] sm:$0xff]  ;;  %v2591_v1 = vld [vmem:[#allocation55_spill] sm:$0xff] }
  0x4c   :  { %1141 = vmatprep.subr.mxu0 %v1459_v8  ;;  %1176 = vmatprep.subr.mxu1 %v1466_v9  ;;  %v2546_v8 = vld [vmem:[#allocation10_spill] sm:$0xff]  ;;  %v520_v9 = vcombine.high %v512_v2, %v512_v2 }
  0x4d   :  { %1142 = vmatpush3.msra.mxu0 %v1471_v10  ;;  %1177 = vmatpush3.msra.mxu1 %v1476_v11  ;;  %v2547_v10 = vld [vmem:[#allocation11_spill] sm:$0xff]  ;;  %v2548_v11 = vld [vmem:[#allocation12_spill] sm:$0xff] }
  0x4e   :  { %1143 = vmatprep.subr.mxu0 %v1483_v12  ;;  %1178 = vmatprep.subr.mxu1 %v1488_v13  ;;  %v521_v12 = vcombine.high %v519_v3, %v519_v3  ;;  %v2549_v13 = vld [vmem:[#allocation13_spill] sm:$0xff] }
  0x4f   :  { %1144 = vmatpush3.msra.mxu0 %v1495_v14  ;;  %1179 = vmatpush3.msra.mxu1 %v1500_v15  ;;  %v2550_v14 = vld [vmem:[#allocation14_spill] sm:$0xff]  ;;  %v2551_v15 = vld [vmem:[#allocation15_spill] sm:$0xff] }
  0x50   :  { %1145 = vmatprep.subr.mxu0 %v1507_v16  ;;  %1180 = vmatprep.subr.mxu1 %v1512_v17  ;;  %v2552_v16 = vld [vmem:[#allocation16_spill] sm:$0xff]  ;;  %v2553_v17 = vld [vmem:[#allocation17_spill] sm:$0xff] }
  0x51   :  { %1146 = vmatpush3.msra.mxu0 %v1519_v18  ;;  %1181 = vmatpush3.msra.mxu1 %v1524_v19  ;;  %v2554_v18 = vld [vmem:[#allocation18_spill] sm:$0xff]  ;;  %v2555_v19 = vld [vmem:[#allocation19_spill] sm:$0xff] }
  0x52   :  { %1147 = vmatprep.subr.mxu0 %v1531_v20  ;;  %1182 = vmatprep.subr.mxu1 %v1536_v21  ;;  %v2556_v20 = vld [vmem:[#allocation20_spill] sm:$0xff]  ;;  %v2557_v21 = vld [vmem:[#allocation21_spill] sm:$0xff] }
  0x53   :  { %1148 = vmatpush3.msra.mxu0 %v1543_v22  ;;  %1183 = vmatpush3.msra.mxu1 %v1548_v23  ;;  %v2558_v22 = vld [vmem:[#allocation22_spill] sm:$0xff]  ;;  %v2559_v23 = vld [vmem:[#allocation23_spill] sm:$0xff] }
  0x54   :  { %1149 = vmatprep.subr.mxu0 %v1555_v24  ;;  %1184 = vmatprep.subr.mxu1 %v1560_v25  ;;  %v2560_v24 = vld [vmem:[#allocation24_spill] sm:$0xff]  ;;  %v2561_v25 = vld [vmem:[#allocation25_spill] sm:$0xff] }
  0x55   :  { %1150 = vmatpush3.msra.mxu0 %v1567_v26  ;;  %1185 = vmatpush3.msra.mxu1 %v1572_v27  ;;  %v2562_v26 = vld [vmem:[#allocation26_spill] sm:$0xff]  ;;  %v2563_v27 = vld [vmem:[#allocation27_spill] sm:$0xff] }
  0x56   :  { %1151 = vmatprep.subr.mxu0 %v1579_v28  ;;  %1186 = vmatprep.subr.mxu1 %v1584_v29  ;;  %v2564_v28 = vld [vmem:[#allocation28_spill] sm:$0xff]  ;;  %v2565_v29 = vld [vmem:[#allocation29_spill] sm:$0xff] }
  0x57   :  { %1152 = vmatpush3.msra.mxu0 %v1591_v33  ;;  %1187 = vmatpush3.msra.mxu1 %v1596_v34  ;;  %v2566_v33 = vld [vmem:[#allocation30_spill] sm:$0xff]  ;;  %v2567_v34 = vld [vmem:[#allocation31_spill] sm:$0xff] }
  0x58   :  { %1153 = vmatprep.subr.mxu0 %v1603_v35  ;;  %1188 = vmatprep.subr.mxu1 %v1608_v36  ;;  %v2568_v35 = vld [vmem:[#allocation32_spill] sm:$0xff]  ;;  %v2569_v36 = vld [vmem:[#allocation33_spill] sm:$0xff] }
  0x59   :  { %1154 = vmatpush3.msra.mxu0 %v1615_v37  ;;  %1189 = vmatpush3.msra.mxu1 %v1620_v38  ;;  %v2570_v37 = vld [vmem:[#allocation34_spill] sm:$0xff]  ;;  %v2571_v38 = vld [vmem:[#allocation35_spill] sm:$0xff] }
  0x5a   :  { %1155 = vmatprep.subr.mxu0 %v1627_v39  ;;  %1190 = vmatprep.subr.mxu1 %v1632_v40  ;;  %v2572_v39 = vld [vmem:[#allocation36_spill] sm:$0xff]  ;;  %v2573_v40 = vld [vmem:[#allocation37_spill] sm:$0xff] }
  0x5b   :  { %1156 = vmatpush3.msra.mxu0 %v1639_v43  ;;  %1191 = vmatpush3.msra.mxu1 %v1644_v44  ;;  %v2574_v43 = vld [vmem:[#allocation38_spill] sm:$0xff]  ;;  %v2575_v44 = vld [vmem:[#allocation39_spill] sm:$0xff] }
  0x5c   :  { %1157 = vmatprep.subr.mxu0 %v1651_v45  ;;  %1192 = vmatprep.subr.mxu1 %v1656_v46  ;;  %v2576_v45 = vld [vmem:[#allocation40_spill] sm:$0xff]  ;;  %v2577_v46 = vld [vmem:[#allocation41_spill] sm:$0xff] }
  0x5d   :  { %1158 = vmatpush3.msra.mxu0 %v1663_v47  ;;  %1193 = vmatpush3.msra.mxu1 %v1668_v48  ;;  %v2578_v47 = vld [vmem:[#allocation42_spill] sm:$0xff]  ;;  %v2579_v48 = vld [vmem:[#allocation43_spill] sm:$0xff] }
  0x5e   :  { %1159 = vmatprep.subr.mxu0 %v1675_v49  ;;  %1194 = vmatprep.subr.mxu1 %v1680_v50  ;;  %v2580_v49 = vld [vmem:[#allocation44_spill] sm:$0xff]  ;;  %v2581_v50 = vld [vmem:[#allocation45_spill] sm:$0xff] }
  0x5f   :  { %1160 = vmatpush3.msra.mxu0 %v1689_v52  ;;  %1195 = vmatpush3.msra.mxu1 %v1694_v53  ;;  %v2582_v52 = vld [vmem:[#allocation46_spill] sm:$0xff]  ;;  %v2583_v53 = vld [vmem:[#allocation47_spill] sm:$0xff] }
  0x60   :  { %1161 = vmatprep.subr.mxu0 %v1704_v55  ;;  %1196 = vmatprep.subr.mxu1 %v1709_v56  ;;  %v2584_v55 = vld [vmem:[#allocation48_spill] sm:$0xff]  ;;  %v2585_v56 = vld [vmem:[#allocation49_spill] sm:$0xff] }
  0x61   :  { %1162 = vmatpush3.msra.mxu0 %v1716_v58  ;;  %1197 = vmatpush3.msra.mxu1 %v2542_v4  ;;  %v2586_v58 = vld [vmem:[#allocation50_spill] sm:$0xff] }
  0x62   :  { %1163 = vmatprep.subr.mxu0 %v2543_v5  ;;  %1198 = vmatprep.subr.mxu1 %v2544_v6  ;;  %v2594_v4 = vld [vmem:[#allocation58_spill] sm:$0xff]  ;;  %v2595_v5 = vld [vmem:[#allocation59_spill] sm:$0xff]  ;;  %v2596_v6 = vld [vmem:[#allocation60_spill] sm:$0xff] }
  0x63   :  { %1164 = vmatpush3.msra.mxu0 %v2545_v7  ;;  %1199 = vmatpush3.msra.mxu1 %v2546_v8  ;;  %v522_v7 = vcombine.high %v31_v0, %v31_v0  ;;  %v2597_v8 = vld [vmem:[#allocation61_spill] sm:$0xff] }
  0x64   :  { %1165 = vmatprep.subr.mxu0 %v2547_v10  ;;  %1200 = vmatprep.subr.mxu1 %v2548_v11  ;;  %v2599_v10 = vld [vmem:[#allocation63_spill] sm:$0xff]  ;;  %v2600_v11 = vld [vmem:[#allocation64_spill] sm:$0xff] }
  0x65   :  { %1166 = vmatpush3.msra.mxu0 %v2549_v13  ;;  %1201 = vmatpush3.msra.mxu1 %v2550_v14  ;;  %v2602_v13 = vld [vmem:[#allocation66_spill] sm:$0xff]  ;;  %v529_v14 = vrot.slane %v31_v0, %v1682_v51 }
  0x66   :  { %1167 = vmatprep.subr.mxu0 %v2551_v15  ;;  %1202 = vmatprep.subr.mxu1 %v2552_v16  ;;  %v2603_v15 = vld [vmem:[#allocation67_spill] sm:$0xff]  ;;  %v2604_v16 = vld [vmem:[#allocation68_spill] sm:$0xff] }
  0x67   :  { %1168 = vmatpush3.msra.mxu0 %v2553_v17  ;;  %611 = vmatprep.mubr.f32.mxu0 %v520_v9  ;;  %v2598_v9 = vld [vmem:[#allocation62_spill] sm:$0xff]  ;;  %v536_v17 = vrot.slane %v522_v7, %v1682_v51 }
  0x68   :  { %1203 = vmatpush3.msra.mxu1 %v2554_v18  ;;  %681 = vmatprep.mubr.f32.mxu1 %v521_v12  ;;  %v2601_v12 = vld [vmem:[#allocation65_spill] sm:$0xff]  ;;  %v32_v51 = vld [vmem:[%s2398_s2] sm:$0x3] }
  0x69   :  { %612 = vmatmul.mubr.f32.vlgmr.msra.gmra.mxu0 %v512_v2  ;;  %682 = vmatmul.mubr.f32.vlgmr.msra.gmra.mxu1 %v519_v3  ;;  %v2592_v2 = vld [vmem:[#allocation56_spill] sm:$0xff]  ;;  %v2593_v3 = vld [vmem:[#allocation57_spill] sm:$0xff] }
  0x6a   :  { %1207 = vmatprep.subr.mxu0 %v2555_v19  ;;  %1242 = vmatprep.subr.mxu1 %v2556_v20  ;;  %v2605_v18 = vld [vmem:[#allocation69_spill] sm:$0xff]  ;;  %v2606_v19 = vld [vmem:[#allocation70_spill] sm:$0xff]  ;;  %v2607_v20 = vld [vmem:[#allocation71_spill] sm:$0xff] }
  0x6b   :  { %1208 = vmatpush3.msra.mxu0 %v2557_v21  ;;  %1243 = vmatpush3.msra.mxu1 %v2558_v22  ;;  %v2608_v21 = vld [vmem:[#allocation72_spill] sm:$0xff]  ;;  %v2609_v22 = vld [vmem:[#allocation73_spill] sm:$0xff] }
  0x6c   :  { %1209 = vmatprep.subr.mxu0 %v2559_v23  ;;  %1244 = vmatprep.subr.mxu1 %v2560_v24  ;;  %v2610_v23 = vld [vmem:[#allocation74_spill] sm:$0xff]  ;;  %v537_v24 = vcombine.high %v529_v14, %v529_v14 }
  0x6d   :  { %1210 = vmatpush3.msra.mxu0 %v2561_v25  ;;  %1245 = vmatpush3.msra.mxu1 %v2562_v26  ;;  %v538_v25 = vcombine.high %v536_v17, %v536_v17  ;;  %v171_v26 = vld [vmem:[%s2401_s5 + $0x48] sm:$0xff] }
  0x6e   :  { %1211 = vmatprep.subr.mxu0 %v2563_v27  ;;  %1246 = vmatprep.subr.mxu1 %v2564_v28  ;;  %v170_v27 = vld [vmem:[%s2401_s5 + $0x40] sm:$0xff]  ;;  %v169_v28 = vld [vmem:[%s2401_s5 + $0x38] sm:$0xff] }
  0x6f   :  { %1212 = vmatpush3.msra.mxu0 %v2565_v29  ;;  %1247 = vmatpush3.msra.mxu1 %v2566_v33  ;;  %v168_v29 = vld [vmem:[%s2401_s5 + $0x30] sm:$0xff]  ;;  %v167_v33 = vld [vmem:[%s2401_s5 + $0x28] sm:$0xff] }
  0x70   :  { %1213 = vmatprep.subr.mxu0 %v2567_v34  ;;  %1248 = vmatprep.subr.mxu1 %v2568_v35  ;;  %v166_v34 = vld [vmem:[%s2401_s5 + $0x20] sm:$0xff]  ;;  %v165_v35 = vld [vmem:[%s2401_s5 + $0x18] sm:$0xff] }
  0x71   :  { %1214 = vmatpush3.msra.mxu0 %v2569_v36  ;;  %1249 = vmatpush3.msra.mxu1 %v2570_v37  ;;  %v164_v36 = vld [vmem:[%s2401_s5 + $0x10] sm:$0xff]  ;;  %v163_v37 = vld [vmem:[%s2401_s5 + $0x8] sm:$0xff] }
  0x72   :  { %1215 = vmatprep.subr.mxu0 %v2571_v38  ;;  %1250 = vmatprep.subr.mxu1 %v2572_v39  ;;  %v162_v38 = vld [vmem:[%s2401_s5] sm:$0xff] }
  0x73   :  { %1216 = vmatpush3.msra.mxu0 %v2573_v40  ;;  %1251 = vmatpush3.msra.mxu1 %v2574_v43 }
  0x74   :  { %1217 = vmatprep.subr.mxu0 %v2575_v44  ;;  %1252 = vmatprep.subr.mxu1 %v2576_v45 }
  0x75   :  { %1218 = vmatpush3.msra.mxu0 %v2577_v46  ;;  %1253 = vmatpush3.msra.mxu1 %v2578_v47 }
  0x76   :  { %1219 = vmatprep.subr.mxu0 %v2579_v48  ;;  %1254 = vmatprep.subr.mxu1 %v2580_v49 }
  0x77   :  { %1220 = vmatpush3.msra.mxu0 %v2581_v50  ;;  %1255 = vmatpush3.msra.mxu1 %v2582_v52 }
  0x78   :  { %1221 = vmatprep.subr.mxu0 %v2583_v53  ;;  %1256 = vmatprep.subr.mxu1 %v2584_v55 }
  0x79   :  { %1222 = vmatpush3.msra.mxu0 %v2585_v56  ;;  %1257 = vmatpush3.msra.mxu1 %v2586_v58 }
  0x7a   :  { %1223 = vmatprep.subr.mxu0 %v2587_v32  ;;  %1258 = vmatprep.subr.mxu1 %v2588_v42  ;;  %v995_v32 = vld [vmem:[%s2400_s4] ss:$0 sm:$0xff] }
  0x7b   :  { %1224 = vmatpush3.msra.mxu0 %v2589_v30  ;;  %1259 = vmatpush3.msra.mxu1 %v2590_v31 }
  0x7c   :  { %1225 = vmatprep.subr.mxu0 %v2591_v1  ;;  %1260 = vmatprep.subr.mxu1 %v2592_v2 }
  0x7d   :  { %1226 = vmatpush3.msra.mxu0 %v2593_v3  ;;  %1261 = vmatpush3.msra.mxu1 %v2594_v4 }
  0x7e   :  { %1227 = vmatprep.subr.mxu0 %v2595_v5  ;;  %1262 = vmatprep.subr.mxu1 %v2596_v6 }
  0x7f   :  { %1228 = vmatpush3.msra.mxu0 %v2597_v8  ;;  %1263 = vmatpush3.msra.mxu1 %v2598_v9 }
  0x80   :  { %1229 = vmatprep.subr.mxu0 %v2599_v10  ;;  %1264 = vmatprep.subr.mxu1 %v2600_v11 }
  0x81   :  { %1230 = vmatpush3.msra.mxu0 %v2601_v12  ;;  %1265 = vmatpush3.msra.mxu1 %v2602_v13 }
  0x82   :  { %1231 = vmatprep.subr.mxu0 %v2603_v15  ;;  %1266 = vmatprep.subr.mxu1 %v2604_v16 }
  0x83   :  { %1232 = vmatpush3.msra.mxu0 %v2605_v18  ;;  %1267 = vmatpush3.msra.mxu1 %v2606_v19 }
  0x84   :  { %1233 = vmatprep.subr.mxu0 %v2607_v20  ;;  %1268 = vmatprep.subr.mxu1 %v2608_v21 }
  0x85   :  { %1234 = vmatpush3.msra.mxu0 %v2609_v22  ;;  %1269 = vmatpush3.msra.mxu1 %v2610_v23 }
  0x86   :  { %1235 = vmatprep.subr.mxu0 %v2142_v41  ;;  %1270 = vmatprep.subr.mxu1 %v2147_v54  ;;  %v1368_v54 = vmov 0   ;;  %v173_v41 = vld [vmem:[%s2401_s5 + $0x58] sm:$0xff] }
  0x87   :  { %1236 = vmatpush3.msra.mxu0 %v2155_v60  ;;  %1271 = vmatpush3.msra.mxu1 %v2160_v61  ;;  %v1369_v61 = vmov 0.0   ;;  %v175_v60 = vld [vmem:[%s2401_s5 + $0x68] sm:$0xff] }
  0x88   :  { %1237 = vmatprep.subr.mxu0 %v2167_v57  ;;  %1272 = vmatprep.subr.mxu1 %v2172_v63  ;;  %v177_v63 = vld [vmem:[%s2401_s5 + $0x78] sm:$0xff]  ;;  %v172_v57 = vld [vmem:[%s2401_s5 + $0x50] sm:$0xff] }
  0x89   :  { %1238 = vmatpush3.msra.mxu0 %v2179_v62  ;;  %751 = vmatprep.mubr.f32.mxu0 %v537_v24  ;;  %v174_v62 = vld [vmem:[%s2401_s5 + $0x60] sm:$0xff] }
  0x8a   :  { %1273 = vmatpush3.msra.mxu1 %v2186_v59  ;;  %821 = vmatprep.mubr.f32.mxu1 %v538_v25  ;;  %v176_v59 = vld [vmem:[%s2401_s5 + $0x70] sm:$0xff] }
  0x8b   :  { %752 = vmatmul.mubr.f32.vlgmr.msra.gmra.mxu0 %v529_v14  ;;  %822 = vmatmul.mubr.f32.vlgmr.msra.gmra.mxu1 %v536_v17 }
  0x8c   :  { %1340 = vset.pattern.permute.xlu0 %v1368_v54  ;;  %1294 = vmatprep.subr.mxu0 %v1369_v61 }
  0x8d   :  { %830 = vperm.xlu0 %1340, %v32_v51   ;;  %1295 = vmatpush3.msra.mxu0 %v177_v63  ;;  %v849_v51 = vstv %s2402_s6 }
  0x8e   :  { %1296 = vmatprep.subr.mxu0 %v1369_v61  ;;  %1326 = vmatprep.mubr.msk.f32.mxu0 %vm1370_vm0, %v1369_v61 }
  0x8f   :  { %1297 = vmatpush3.msra.mxu0 %v176_v59 }
  0x90   :  { %1298 = vmatprep.subr.mxu0 %v1369_v61 }
  0x91   :  { %1299 = vmatpush3.msra.mxu0 %v175_v60 }
  0x92   :  { %1300 = vmatprep.subr.mxu0 %v1369_v61 }
  0x93   :  { %1301 = vmatpush3.msra.mxu0 %v174_v62 }
  0x94   :  { %1302 = vmatprep.subr.mxu0 %v1369_v61 }
  0x95   :  { %1303 = vmatpush3.msra.mxu0 %v173_v41 }
  0x96   :  { %1304 = vmatprep.subr.mxu0 %v1369_v61 }
  0x97   :  { %1305 = vmatpush3.msra.mxu0 %v172_v57 }
  0x98   :  { %1306 = vmatprep.subr.mxu0 %v1369_v61 }
  0x99   :  { %1307 = vmatpush3.msra.mxu0 %v171_v26 }
  0x9a   :  { %1308 = vmatprep.subr.mxu0 %v1369_v61 }
  0x9b   :  { %1309 = vmatpush3.msra.mxu0 %v170_v27 }
  0x9c   :  { %1310 = vmatprep.subr.mxu0 %v1369_v61 }
  0x9d   :  { %1311 = vmatpush3.msra.mxu0 %v169_v28 }
  0x9e   :  { %1312 = vmatprep.subr.mxu0 %v1369_v61 }
  0x9f   :  { %1313 = vmatpush3.msra.mxu0 %v168_v29 }
  0xa0   :  { %1314 = vmatprep.subr.mxu0 %v1369_v61 }
  0xa1   :  { %1315 = vmatpush3.msra.mxu0 %v167_v33 }
  0xa2   :  { %1316 = vmatprep.subr.mxu0 %v1369_v61 }
  0xa3   :  { %1317 = vmatpush3.msra.mxu0 %v166_v34 }
  0xa4   :  { %1318 = vmatprep.subr.mxu0 %v1369_v61 }
  0xa5   :  { %1319 = vmatpush3.msra.mxu0 %v165_v35 }
  0xa6   :  { %1320 = vmatprep.subr.mxu0 %v1369_v61 }
  0xa7   :  { %1321 = vmatpush3.msra.mxu0 %v164_v36 }
  0xa8   :  { %1322 = vmatprep.subr.mxu0 %v1369_v61 }
  0xa9   :  { %1323 = vmatpush3.msra.mxu0 %v163_v37 }
  0xaa   :  { %1324 = vmatprep.subr.mxu0 %v1369_v61 }
  0xab   :  { %1325 = vmatpush3.msra.mxu0 %v162_v38 }
  0xe4   :  { %v1029_v39 = vpop.f32.mrf.mxu0 }
  0xe5   :  { %v1064_v40 = vpop.f32.mrf.mxu1 }
  0xe6   :  { %v1030_v43 = vpop.f32.mrf.mxu0 }
  0xe7   :  { %v1065_v44 = vpop.f32.mrf.mxu1  ;;  %v1031_v45 = vadd.f32 %v1030_v43, %v1029_v39 }
  0xe8   :  { %v1066_v46 = vadd.f32 %v1065_v44, %v1064_v40 }
  0xea   :  { %v360_v50 = vadd.f32 %v1066_v46, %v1031_v45 }
 0x106   :  { %v1099_v47 = vpop.f32.mrf.mxu0 }
 0x108   :  { %v1134_v48 = vpop.f32.mrf.mxu1  ;;  %v1100_v49 = vpop.f32.mrf.mxu0 }
 0x109   :  { %v1101_v52 = vadd.f32 %v1100_v49, %v1099_v47  ;;  %v831_v15 = vpop.permute.xlu0 %830 }
 0x10a   :  { %v1135_v53 = vpop.f32.mrf.mxu1 }
 0x10b   :  { %v430_v55 = vadd.f32 %v1101_v52, %v360_v50  ;;  %v1136_v56 = vadd.f32 %v1135_v53, %v1134_v48 }
 0x10d   :  { %v500_v58 = vadd.f32 %v1136_v56, %v430_v55 }
 0x10f   :  { %1345 = vtanh.f32 %v500_v58 }
 0x11c   :  { %v1346_v42 = vpop.eup %1345 }
 0x11d   :  { %v844_v30 = vmul.f32 %v1346_v42, %v995_v32 }
 0x11f   :  { %v846_v31 = vsel %vm845_vm1, %v844_v30, 0.0 }
 0x120   :  { %847 = vadd.xlane.f32.xlu1 %v846_v31 }
 0x129   :  { %v1169_v0 = vpop.f32.mrf.mxu0  ;;  %v1204_v1 = vpop.f32.mrf.mxu1 }
 0x12b   :  { %v1170_v2 = vpop.f32.mrf.mxu0  ;;  %v1205_v3 = vpop.f32.mrf.mxu1 }
 0x12c   :  { %v1171_v4 = vadd.f32 %v1170_v2, %v1169_v0  ;;  %v1206_v5 = vadd.f32 %v1205_v3, %v1204_v1 }
 0x12e   :  { %v684_v10 = vadd.f32 %v1206_v5, %v1171_v4 }
 0x14b   :  { %v1239_v6 = vpop.f32.mrf.mxu0  ;;  %v1274_v7 = vpop.f32.mrf.mxu1 }
 0x14d   :  { %v1240_v8 = vpop.f32.mrf.mxu0  ;;  %v1275_v9 = vpop.f32.mrf.mxu1 }
 0x14e   :  { %v1241_v11 = vadd.f32 %v1240_v8, %v1239_v6  ;;  %v1276_v13 = vadd.f32 %v1275_v9, %v1274_v7 }
 0x150   :  { %v754_v12 = vadd.f32 %v1241_v11, %v684_v10 }
 0x152   :  { %v824_v14 = vadd.f32 %v1276_v13, %v754_v12 }
 0x154   :  { %1347 = vtanh.f32 %v824_v14  ;;  %v827_v16 = vsub.f32 %v500_v58, %v824_v14 }
 0x156   :  { %v833_v17 = vmul.f32 %v831_v15, %v827_v16 }
 0x158   :  { %v834_v18 = vadd.f32 %v833_v17, %v824_v14 }
 0x15a   :  { %1349 = vtanh.f32 %v834_v18 }
 0x161   :  { %v1348_v19 = vpop.eup %1347 }
 0x162   :  { %v851_v20 = vmul.f32 %v1348_v19, %v995_v32 }
 0x164   :  { %v852_v21 = vsel %vm845_vm1, %v851_v20, 0.0 }
 0x165   :  { %853 = vadd.xlane.f32.xlu1 %v852_v21 }
 0x167   :  { %v1350_v22 = vpop.eup %1349 }
 0x168   :  { %v856_v23 = vmul.f32 %v1350_v22, %v1350_v22 }
 0x16a   :  { %v857_v24 = vsub.f32 1.0, %v856_v23 }
 0x16c   :  { %v858_v25 = vmul.f32 %v995_v32, %v857_v24 }
 0x16e   :  { %1327 = vmatmul.mubr.f32.vlgmr.msra.gmra.mxu0 %v858_v25 }
 0x1a9   :  { %v848_v54 = vpop.xlane.xlu1 %847 }
 0x1aa   :  { %v850_v61 = vadd.f32 %v849_v51, %v848_v54 }
 0x1ac   :  { %v944_v63 = vsel %vm943_vm2, %v850_v61, 0.0 }
 0x1ad   :  { %945 = vadd.xlane.f32.xlu1 %v944_v63 }
 0x1ee   :  { %v854_v59 = vpop.xlane.xlu1 %853 }
 0x1ef   :  { %v855_v60 = vadd.f32 %v854_v59, %v849_v51 }
 0x1f1   :  { %v956_v62 = vsel %vm943_vm2, %v855_v60, 0.0 }
 0x1f2   :  { %957 = vadd.xlane.f32.xlu1 %v956_v62 }
 0x22e   :  { %v925_v41 = vpop.f32.mrf.mxu0 }
 0x22f   :  { %v929_v57 = vmul.f32 %v925_v41, %v858_v25 }
 0x230   :  { %v1328_v26 = vpop.f32.mrf.mxu0 }
 0x231   :  { %v930_v27 = vsel %vm845_vm1, %v929_v57, 0.0 }
 0x232   :  { %931 = vadd.xlane.f32.xlu0 %v930_v27 }
 0x236   :  { %v946_v28 = vpop.xlane.xlu1 %945 }
 0x237   :  { %v947_v29 = vrot.slane %v946_v28, 4 }
 0x239   :  { %v948_v33 = vadd.f32 %v947_v29, %v946_v28 }
 0x23b   :  { %v949_v34 = vrot.slane %v948_v33, 2 }
 0x23d   :  { %v950_v35 = vadd.f32 %v949_v34, %v948_v33 }
 0x23f   :  { %v951_v36 = vrot.slane %v950_v35, 1 }
 0x241   :  { %v952_v37 = vadd.f32 %v951_v36, %v950_v35 }
 0x243   :  { %1329 = vpush %v952_v37 }
 0x274   :  { %s1330_s6 = spop %1329 }
 0x275   :  { %955 = sst [smem:[#allocation3]] %s1330_s6 }
 0x27b   :  { %v958_v38 = vpop.xlane.xlu1 %957 }
 0x27c   :  { %v959_v39 = vrot.slane %v958_v38, 4 }
 0x27e   :  { %v960_v40 = vadd.f32 %v959_v39, %v958_v38 }
 0x280   :  { %v961_v43 = vrot.slane %v960_v40, 2 }
 0x282   :  { %v962_v44 = vadd.f32 %v961_v43, %v960_v40 }
 0x284   :  { %v963_v45 = vrot.slane %v962_v44, 1 }
 0x286   :  { %v964_v46 = vadd.f32 %v963_v45, %v962_v44 }
 0x288   :  { %1331 = vpush %v964_v46 }
 0x2b9   :  { %s1332_s16 = spop %1331 }
 0x2ba   :  { %967 = sst [smem:[#allocation3 + $0x1]] %s1332_s16 }
 0x2bb   :  { %v932_v47 = vpop.xlane.xlu0 %931 }
 0x2bc   :  { %v933_v48 = vmax.f32 %v932_v47, 0.0 }
 0x2be   :  { %1351 = vrsqrt.f32 %v933_v48  ;;  %vm936_vm3 = vcmp.eq.f32.partialorder %v933_v48, inf  ;;  %v939_v52 = vand.u32 2147483648, %v933_v48  ;;  %vm938_vm4 = vcmp.eq.f32.partialorder %v933_v48, 0.0 }
 0x2cb   :  { %v1352_v49 = vpop.eup %1351 }
 0x2cc   :  { %v935_v50 = vmul.f32 %v1352_v49, %v933_v48 }
 0x2ce   :  { %v937_v53 = vsel %vm936_vm3, %v933_v48, %v935_v50 }
 0x2cf   :  { %v940_v55 = vsel %vm938_vm4, %v939_v52, %v937_v53 }
 0x2d0   :  { %v996_v56 = vadd.f32 -1.0, %v940_v55 }
 0x2d2   :  { %v942_v58 = vmul.f32 %v996_v56, %v996_v56 }
 0x2d4   :  { %v968_v32 = vsel %vm943_vm2, %v942_v58, 0.0 }
 0x2d5   :  { %969 = vadd.xlane.f32.xlu1 %v968_v32 }
 0x35e   :  { %v970_v42 = vpop.xlane.xlu1 %969 }
 0x35f   :  { %v971_v30 = vrot.slane %v970_v42, 4 }
 0x361   :  { %v972_v31 = vadd.f32 %v971_v30, %v970_v42 }
 0x363   :  { %v973_v0 = vrot.slane %v972_v31, 2 }
 0x365   :  { %v974_v1 = vadd.f32 %v973_v0, %v972_v31 }
 0x367   :  { %v975_v2 = vrot.slane %v974_v1, 1 }
 0x369   :  { %v976_v3 = vadd.f32 %v975_v2, %v974_v1 }
 0x36b   :  { %1333 = vpush %v976_v3 }
 0x39c   :  { %s1334_s19 = spop %1333 }
 0x39d   :  { %979 = sst [smem:[#allocation3 + $0x2]] %s1334_s19 }
 0x39e   :  { %1364 = shalt.err (!%p1361_p4)
}
 0x39f   :  { %s1371_s21 = smov [#allocation3]  }
 0x3a0   :  { %989 = dma.smem_to_vmem %s1371_s21, 16, %s987_s0, [#allocation4]  }
 0x3a1   :  { %1365 = dma.done.wait [#allocation4], 16  }
 0x3a2   :  { %1366 = vsyncadd [#allocation4], 4294967280 }
 0x3a3   :  { %993 = sfence }
 0x3a4   :  { %994 = vsyncpa [#allocation4], 1 }

</bundles_post_ra>
